<compile_context>
chip_gen: v6e
topology: v6e:2x2x1
jax: 0.10.0
libtpu: 0.0.40
codegen_flags: <defaults>
</compile_context>

<pallas_src>
import jax
import jax.numpy as jnp
from jax.experimental import pallas as pl
from jax.experimental.pallas import tpu as pltpu


# --------------------------------------------------------------------------- #
# Kernel
# --------------------------------------------------------------------------- #
def fusion_kernel(x1_ref, x2_ref, w1a_ref, w1b_ref, b1_ref, w2_ref, b2_ref,
                  o_ref, h_acc):
    # x1_ref/x2_ref : (bt, d_tile, l_tile)  channel-major activation tiles
    # w1a_ref/w1b_ref: (H, d_tile)          fc1 weight split over the concat axis
    # b1_ref        : (H, 1)   f32          fc1 bias
    # w2_ref        : (D, H)                fc2 weight (torch layout)
    # b2_ref        : (D, 1)   f32          fc2 bias
    # o_ref         : (bt, D, l_tile)
    # h_acc         : (bt, H, l_tile) f32   matmul-1 accumulator (K-tiled over D)
    k = pl.program_id(2)
    nk = pl.num_programs(2)
    bt = x1_ref.shape[0]

    @pl.when(k == 0)
    def _init():
        h_acc[...] = jnp.zeros_like(h_acc)

    # Accumulate fc1 over the (possibly tiled) input-channel axis.
    for t in range(bt):                                   # static unroll
        h_acc[t] += (
            jnp.dot(w1a_ref[...], x1_ref[t], preferred_element_type=jnp.float32)
            + jnp.dot(w1b_ref[...], x2_ref[t], preferred_element_type=jnp.float32))

    @pl.when(k == nk - 1)
    def _finalize():
        # bias + ReLU + fc2 + bias, all fused; VPU work is free filler here.
        for t in range(bt):                                # static unroll
            h = jnp.maximum(h_acc[t] + b1_ref[...], 0.0).astype(w2_ref.dtype)
            y = jnp.dot(w2_ref[...], h, preferred_element_type=jnp.float32) + b2_ref[...]
            o_ref[t] = y.astype(o_ref.dtype)


# --------------------------------------------------------------------------- #
# Helpers
# --------------------------------------------------------------------------- #
def _vmem_capacity_bytes():
    try:
        cap = int(pltpu.get_tpu_info().vmem_capacity_bytes)
        if cap > 0:
            return cap
    except Exception:
        pass
    return 64 * 1024 * 1024          # conservative fallback (v7x per-TC size)


def _spec(shape, index_map, *, single_buffer=False):
    """BlockSpec, optionally single-buffered (grid-invariant operands)."""
    if single_buffer:
        try:
            return pl.BlockSpec(shape, index_map, pipeline_mode=pl.Buffered(1))
        except (TypeError, AttributeError, Exception):
            pass
    return pl.BlockSpec(shape, index_map)


# --------------------------------------------------------------------------- #
# Wrapper
# --------------------------------------------------------------------------- #
def fusion_forward(tensor1, tensor2, w1, b1, w2, b2, *,
                   l_tile=None, d_tile=None, batch_tile=None,
                   compute_dtype=jnp.bfloat16, out_dtype=None,
                   vmem_limit_bytes=None):
    """tensor1, tensor2: (B, D, L) -> (B, D, L).

    Weights use the torch nn.Linear layout:
      w1: (D//4, 2*D), b1: (D//4,), w2: (D, D//4), b2: (D,)
    compute_dtype: operand dtype (bf16 default, f32 accumulation always kept).
    out_dtype: output dtype (defaults to tensor1.dtype).
    """
    B, D, L = tensor1.shape
    hidden = w1.shape[0]
    assert w1.shape == (hidden, 2 * D)
    assert b1.shape == (hidden,)
    assert w2.shape == (D, hidden)
    assert b2.shape == (D,)

    out_dtype = out_dtype if out_dtype is not None else tensor1.dtype
    cdt = compute_dtype if compute_dtype is not None else tensor1.dtype
    act_item = jnp.dtype(cdt).itemsize
    out_item = jnp.dtype(out_dtype).itemsize
    w_item = act_item

    cap = _vmem_capacity_bytes()
    budget = (cap * 3) // 4                       # leave headroom for the compiler

    # ---- fc1 input-channel (K) tiling for very large D ----------------------
    bias_pad = (hidden + D) * 128 * 4             # (H,1)/(D,1) pad lanes to 128
    if d_tile is not None:
        if d_tile >= D or d_tile % 128 != 0 or D % d_tile != 0:
            d_tile = D
    else:
        d_tile = D
        if 3 * hidden * D * w_item + bias_pad > budget // 2:
            for cand in (4096, 2048, 1024, 512, 256, 128):
                if cand < D and D % cand == 0:
                    d_tile = cand
                    if (4 * hidden * cand + hidden * D) * w_item + bias_pad <= budget // 2:
                        break
            # TODO(synk): for extreme D where w2 alone exceeds the VMEM budget,
            # also tile w2's output rows over an additional grid axis.
    n_k = D // d_tile
    w1_bufs = 1 if n_k == 1 else 2                # single-buffer only if grid-invariant
    weight_vmem = (2 * w1_bufs * hidden * d_tile + hidden * D) * w_item + bias_pad

    # ---- L tile from the VMEM budget ----------------------------------------
    per_col = (2 * 2 * d_tile * act_item          # x1/x2, double-buffered
               + 2 * D * out_item                 # output, double-buffered
               + hidden * 4 + D * 4)              # h_acc + f32 y temps
    l_max = max(128, (budget - weight_vmem) // max(per_col, 1))
    if l_tile is not None:
        l_tile = L if l_tile >= L else max(128, (l_tile // 128) * 128)
    else:
        if L <= min(l_max, 1024):
            l_tile = L
        else:
            l_tile = min(l_max, 1024)
            l_tile = (l_tile // 256) * 256 if l_tile >= 256 else 128

    # ---- batch tile: amortize per-step overhead for tiny shapes --------------
    if batch_tile is not None:
        bt = max(1, min(int(batch_tile), B))
    else:
        bt = 1
        step_bytes = D * l_tile * act_item
        if l_tile == L and step_bytes < 256 * 1024:
            bt = int(min(B, 8, max(1, (256 * 1024) // max(step_bytes, 1))))

    n_b = pl.cdiv(B, bt)
    n_l = pl.cdiv(L, l_tile)

    # ---- v7x: ensure >= 2 "parallel" grid steps so both TensorCores work -----
    if n_b * n_l < 2 and l_tile == L and L >= 256:
        l_tile = max(128, ((L // 2) // 128) * 128)
        n_l = pl.cdiv(L, l_tile)

    # ---- explicit scoped-VMEM limit ------------------------------------------
    if vmem_limit_bytes is None:
        act_vmem = bt * l_tile * per_col
        vmem_limit_bytes = max(weight_vmem + act_vmem + (4 << 20), 32 << 20)
    vmem_limit_bytes = int(min(vmem_limit_bytes, cap))

    # ---- operands (fc1 weight split over the virtual concat axis) ------------
    x1 = tensor1.astype(cdt)
    x2 = tensor2.astype(cdt)
    w1a = w1[:, :D].astype(cdt)
    w1b = w1[:, D:].astype(cdt)
    w2c = w2.astype(cdt)
    b1_2d = b1.astype(jnp.float32).reshape(hidden, 1)
    b2_2d = b2.astype(jnp.float32).reshape(D, 1)

    act_map = lambda b, l, k: (b, k, l)
    w1_map = lambda b, l, k: (0, k)
    const_map = lambda b, l, k: (0, 0)
    out_map = lambda b, l, k: (b, 0, l)

    in_specs = [
        pl.BlockSpec((bt, d_tile, l_tile), act_map),                    # x1
        pl.BlockSpec((bt, d_tile, l_tile), act_map),                    # x2
        _spec((hidden, d_tile), w1_map, single_buffer=(n_k == 1)),      # w1a
        _spec((hidden, d_tile), w1_map, single_buffer=(n_k == 1)),      # w1b
        _spec((hidden, 1), const_map, single_buffer=True),              # b1
        _spec((D, hidden), const_map, single_buffer=True),              # w2
        _spec((D, 1), const_map, single_buffer=True),                   # b2
    ]
    out_specs = pl.BlockSpec((bt, D, l_tile), out_map)

    return pl.pallas_call(
        fusion_kernel,
        out_shape=jax.ShapeDtypeStruct((B, D, L), out_dtype),
        grid_spec=pltpu.PrefetchScalarGridSpec(
            num_scalar_prefetch=0,
            grid=(n_b, n_l, n_k),
            in_specs=in_specs,
            out_specs=out_specs,
            scratch_shapes=[pltpu.VMEM((bt, hidden, l_tile), jnp.float32)],
        ),
        compiler_params=pltpu.CompilerParams(
            dimension_semantics=("parallel", "parallel", "arbitrary"),
            vmem_limit_bytes=vmem_limit_bytes,
        ),
    )(x1, x2, w1a, w1b, b1_2d, w2c, b2_2d)


# --------------------------------------------------------------------------- #
# Params + pure-JAX reference (mirrors the PyTorch module semantics)
# --------------------------------------------------------------------------- #
def init_params(key, dimension, dtype=jnp.float32):
    """torch nn.Linear layouts:
    fc1: Linear(2*dim, dim//4) -> weight (dim//4, 2*dim), bias (dim//4,)
    fc2: Linear(dim//4, dim)   -> weight (dim, dim//4),   bias (dim,)
    """
    hidden = dimension // 4
    k1, k2, k3, k4 = jax.random.split(key, 4)
    lim1 = 1.0 / jnp.sqrt(2.0 * dimension)
    lim2 = 1.0 / jnp.sqrt(float(hidden))
    w1 = jax.random.uniform(k1, (hidden, 2 * dimension), dtype, -lim1, lim1)
    b1 = jax.random.uniform(k2, (hidden,), dtype, -lim1, lim1)
    w2 = jax.random.uniform(k3, (dimension, hidden), dtype, -lim2, lim2)
    b2 = jax.random.uniform(k4, (dimension,), dtype, -lim2, lim2)
    return w1, b1, w2, b2


def reference_forward(tensor1, tensor2, w1, b1, w2, b2):
    x = jnp.concatenate([tensor1, tensor2], axis=1)     # (B, 2D, L)
    x = jnp.swapaxes(x, 1, 2)                           # (B, L, 2D)
    h = jnp.maximum(x @ w1.T + b1, 0.0)                 # (B, L, D//4)
    y = h @ w2.T + b2                                   # (B, L, D)
    return jnp.swapaxes(y, 1, 2)                        # (B, D, L)


# --------------------------------------------------------------------------- #
# Demo / correctness checks
# --------------------------------------------------------------------------- #
if __name__ == "__main__":
    key = jax.random.PRNGKey(0)

    def run_case(B, D, L, case_key, **kw):
        k1, k2, kp = jax.random.split(case_key, 3)
        t1 = jax.random.normal(k1, (B, D, L), jnp.float32)
        t2 = jax.random.normal(k2, (B, D, L), jnp.float32)
        w1, b1, w2, b2 = init_params(kp, D)
        out = jax.block_until_ready(fusion_forward(t1, t2, w1, b1, w2, b2, **kw))
        ref = reference_forward(t1, t2, w1, b1, w2, b2)
        return out, ref

    # 1) tiny shape, exact f32 path (exercises bt>1 batch-tiling, one grid step)
    k, key = jax.random.split(key)
    out, ref = run_case(4, 32, 8, k, compute_dtype=jnp.float32)
    assert out.shape == ref.shape, out.shape
    assert jnp.allclose(out, ref, atol=1e-4, rtol=1e-4), "mismatch (test 1, f32 tiny)"

    # 2) default bf16 compute: L tiling + 2-parallel-step split path
    k, key = jax.random.split(key)
    out, ref = run_case(2, 64, 256, k)
    assert out.shape == ref.shape, out.shape
    assert jnp.allclose(out, ref, atol=5e-2, rtol=5e-2), "mismatch (test 2, bf16)"

    # 3) f32 with forced fc1 K-tiling (d_tile < D -> accumulator grid axis)
    k, key = jax.random.split(key)
    out, ref = run_case(2, 256, 128, k, compute_dtype=jnp.float32, d_tile=128)
    assert out.shape == ref.shape, out.shape
    assert jnp.allclose(out, ref, atol=1e-4, rtol=1e-4), "mismatch (test 3, K-tiled)"

    print("KERNEL_OK")
</pallas_src>

<mosaic_0001>
module attributes {stable_mosaic.version = 11 : i64} {
  func.func @fusion_kernel(%arg0: i32, %arg1: i32, %arg2: i32, %arg3: memref<4x32x8xf32, #tpu.memory_space<vmem>>, %arg4: memref<4x32x8xf32, #tpu.memory_space<vmem>>, %arg5: memref<8x32xf32, #tpu.memory_space<vmem>>, %arg6: memref<8x32xf32, #tpu.memory_space<vmem>>, %arg7: memref<8x1xf32, #tpu.memory_space<vmem>>, %arg8: memref<32x8xf32, #tpu.memory_space<vmem>>, %arg9: memref<32x1xf32, #tpu.memory_space<vmem>>, %arg10: memref<4x32x8xf32, #tpu.memory_space<vmem>>, %arg11: memref<4x8x8xf32, #tpu.memory_space<vmem>>) attributes {dimension_semantics = [#tpu.dimension_semantics<parallel>, #tpu.dimension_semantics<parallel>, #tpu.dimension_semantics<arbitrary>], iteration_bounds = array<i64: 1, 1, 1>, scalar_prefetch = 0 : i64, scratch_operands = 1 : i64, tpu.core_type = #tpu.core_type<tc>, window_params = [{transform_indices = @transform_0, window_bounds = array<i64: 4, 32, 8>}, {transform_indices = @transform_1, window_bounds = array<i64: 4, 32, 8>}, {pipeline_mode = #tpu.pipeline_mode<synchronous>, transform_indices = @transform_2, window_bounds = array<i64: 8, 32>}, {pipeline_mode = #tpu.pipeline_mode<synchronous>, transform_indices = @transform_3, window_bounds = array<i64: 8, 32>}, {pipeline_mode = #tpu.pipeline_mode<synchronous>, transform_indices = @transform_4, window_bounds = array<i64: 8, 1>}, {pipeline_mode = #tpu.pipeline_mode<synchronous>, transform_indices = @transform_5, window_bounds = array<i64: 32, 8>}, {pipeline_mode = #tpu.pipeline_mode<synchronous>, transform_indices = @transform_6, window_bounds = array<i64: 32, 1>}, {transform_indices = @transform_7, window_bounds = array<i64: 4, 32, 8>}]} {
    %c0_i32 = arith.constant 0 : i32
    %0 = arith.cmpi eq, %arg2, %c0_i32 : i32
    %1 = arith.extui %0 : i1 to i32
    %c0_i32_0 = arith.constant 0 : i32
    %2 = arith.cmpi ne, %1, %c0_i32_0 : i32
    scf.if %2 {
      %cst_70 = arith.constant 0.000000e+00 : f32
      %66 = vector.broadcast %cst_70 : f32 to vector<4x8x8xf32>
      %c0_71 = arith.constant 0 : index
      %c0_72 = arith.constant 0 : index
      %c0_73 = arith.constant 0 : index
      %67 = vector.load %arg11[%c0_71, %c0_72, %c0_73] : memref<4x8x8xf32, #tpu.memory_space<vmem>>, vector<4x8x8xf32>
      tpu.vector_store %arg11[%c0_71, %c0_72, %c0_73], %66 {strides = array<i32>} : memref<4x8x8xf32, #tpu.memory_space<vmem>>, vector<4x8x8xf32>,
    } else {
    }
    %c0 = arith.constant 0 : index
    %c0_1 = arith.constant 0 : index
    %c0_2 = arith.constant 0 : index
    %3 = vector.load %arg11[%c0, %c0_1, %c0_2] : memref<4x8x8xf32, #tpu.memory_space<vmem>>, vector<1x8x8xf32>
    %4 = vector.shape_cast %3 : vector<1x8x8xf32> to vector<8x8xf32>
    %c0_3 = arith.constant 0 : index
    %c0_4 = arith.constant 0 : index
    %5 = vector.load %arg5[%c0_3, %c0_4] : memref<8x32xf32, #tpu.memory_space<vmem>>, vector<8x32xf32>
    %c0_5 = arith.constant 0 : index
    %c0_6 = arith.constant 0 : index
    %c0_7 = arith.constant 0 : index
    %6 = vector.load %arg3[%c0_5, %c0_6, %c0_7] : memref<4x32x8xf32, #tpu.memory_space<vmem>>, vector<1x32x8xf32>
    %7 = vector.shape_cast %6 : vector<1x32x8xf32> to vector<32x8xf32>
    %cst = arith.constant dense<0.000000e+00> : vector<8x8xf32>
    %8 = tpu.matmul %5, %7, %cst {dimension_numbers = #tpu.dot_dimension_numbers<[1], [0], [0], [1], [0, 0, 1, 1], [], []>} : vector<8x32xf32>, vector<32x8xf32>, vector<8x8xf32> -> vector<8x8xf32>
    %c0_8 = arith.constant 0 : index
    %c0_9 = arith.constant 0 : index
    %9 = vector.load %arg6[%c0_8, %c0_9] : memref<8x32xf32, #tpu.memory_space<vmem>>, vector<8x32xf32>
    %c0_10 = arith.constant 0 : index
    %c0_11 = arith.constant 0 : index
    %c0_12 = arith.constant 0 : index
    %10 = vector.load %arg4[%c0_10, %c0_11, %c0_12] : memref<4x32x8xf32, #tpu.memory_space<vmem>>, vector<1x32x8xf32>
    %11 = vector.shape_cast %10 : vector<1x32x8xf32> to vector<32x8xf32>
    %cst_13 = arith.constant dense<0.000000e+00> : vector<8x8xf32>
    %12 = tpu.matmul %9, %11, %cst_13 {dimension_numbers = #tpu.dot_dimension_numbers<[1], [0], [0], [1], [0, 0, 1, 1], [], []>} : vector<8x32xf32>, vector<32x8xf32>, vector<8x8xf32> -> vector<8x8xf32>
    %13 = arith.addf %8, %12 : vector<8x8xf32>
    %14 = arith.addf %4, %13 : vector<8x8xf32>
    %c0_14 = arith.constant 0 : index
    %c0_15 = arith.constant 0 : index
    %c0_16 = arith.constant 0 : index
    %15 = vector.load %arg11[%c0_14, %c0_15, %c0_16] : memref<4x8x8xf32, #tpu.memory_space<vmem>>, vector<1x8x8xf32>
    %16 = vector.shape_cast %15 : vector<1x8x8xf32> to vector<8x8xf32>
    %17 = vector.shape_cast %14 : vector<8x8xf32> to vector<1x8x8xf32>
    tpu.vector_store %arg11[%c0_14, %c0_15, %c0_16], %17 {strides = array<i32>} : memref<4x8x8xf32, #tpu.memory_space<vmem>>, vector<1x8x8xf32>,
    %c1 = arith.constant 1 : index
    %c0_17 = arith.constant 0 : index
    %c0_18 = arith.constant 0 : index
    %18 = vector.load %arg11[%c1, %c0_17, %c0_18] : memref<4x8x8xf32, #tpu.memory_space<vmem>>, vector<1x8x8xf32>
    %19 = vector.shape_cast %18 : vector<1x8x8xf32> to vector<8x8xf32>
    %c0_19 = arith.constant 0 : index
    %c0_20 = arith.constant 0 : index
    %20 = vector.load %arg5[%c0_19, %c0_20] : memref<8x32xf32, #tpu.memory_space<vmem>>, vector<8x32xf32>
    %c1_21 = arith.constant 1 : index
    %c0_22 = arith.constant 0 : index
    %c0_23 = arith.constant 0 : index
    %21 = vector.load %arg3[%c1_21, %c0_22, %c0_23] : memref<4x32x8xf32, #tpu.memory_space<vmem>>, vector<1x32x8xf32>
    %22 = vector.shape_cast %21 : vector<1x32x8xf32> to vector<32x8xf32>
    %cst_24 = arith.constant dense<0.000000e+00> : vector<8x8xf32>
    %23 = tpu.matmul %20, %22, %cst_24 {dimension_numbers = #tpu.dot_dimension_numbers<[1], [0], [0], [1], [0, 0, 1, 1], [], []>} : vector<8x32xf32>, vector<32x8xf32>, vector<8x8xf32> -> vector<8x8xf32>
    %c0_25 = arith.constant 0 : index
    %c0_26 = arith.constant 0 : index
    %24 = vector.load %arg6[%c0_25, %c0_26] : memref<8x32xf32, #tpu.memory_space<vmem>>, vector<8x32xf32>
    %c1_27 = arith.constant 1 : index
    %c0_28 = arith.constant 0 : index
    %c0_29 = arith.constant 0 : index
    %25 = vector.load %arg4[%c1_27, %c0_28, %c0_29] : memref<4x32x8xf32, #tpu.memory_space<vmem>>, vector<1x32x8xf32>
    %26 = vector.shape_cast %25 : vector<1x32x8xf32> to vector<32x8xf32>
    %cst_30 = arith.constant dense<0.000000e+00> : vector<8x8xf32>
    %27 = tpu.matmul %24, %26, %cst_30 {dimension_numbers = #tpu.dot_dimension_numbers<[1], [0], [0], [1], [0, 0, 1, 1], [], []>} : vector<8x32xf32>, vector<32x8xf32>, vector<8x8xf32> -> vector<8x8xf32>
    %28 = arith.addf %23, %27 : vector<8x8xf32>
    %29 = arith.addf %19, %28 : vector<8x8xf32>
    %c1_31 = arith.constant 1 : index
    %c0_32 = arith.constant 0 : index
    %c0_33 = arith.constant 0 : index
    %30 = vector.load %arg11[%c1_31, %c0_32, %c0_33] : memref<4x8x8xf32, #tpu.memory_space<vmem>>, vector<1x8x8xf32>
    %31 = vector.shape_cast %30 : vector<1x8x8xf32> to vector<8x8xf32>
    %32 = vector.shape_cast %29 : vector<8x8xf32> to vector<1x8x8xf32>
    tpu.vector_store %arg11[%c1_31, %c0_32, %c0_33], %32 {strides = array<i32>} : memref<4x8x8xf32, #tpu.memory_space<vmem>>, vector<1x8x8xf32>,
    %c2 = arith.constant 2 : index
    %c0_34 = arith.constant 0 : index
    %c0_35 = arith.constant 0 : index
    %33 = vector.load %arg11[%c2, %c0_34, %c0_35] : memref<4x8x8xf32, #tpu.memory_space<vmem>>, vector<1x8x8xf32>
    %34 = vector.shape_cast %33 : vector<1x8x8xf32> to vector<8x8xf32>
    %c0_36 = arith.constant 0 : index
    %c0_37 = arith.constant 0 : index
    %35 = vector.load %arg5[%c0_36, %c0_37] : memref<8x32xf32, #tpu.memory_space<vmem>>, vector<8x32xf32>
    %c2_38 = arith.constant 2 : index
    %c0_39 = arith.constant 0 : index
    %c0_40 = arith.constant 0 : index
    %36 = vector.load %arg3[%c2_38, %c0_39, %c0_40] : memref<4x32x8xf32, #tpu.memory_space<vmem>>, vector<1x32x8xf32>
    %37 = vector.shape_cast %36 : vector<1x32x8xf32> to vector<32x8xf32>
    %cst_41 = arith.constant dense<0.000000e+00> : vector<8x8xf32>
    %38 = tpu.matmul %35, %37, %cst_41 {dimension_numbers = #tpu.dot_dimension_numbers<[1], [0], [0], [1], [0, 0, 1, 1], [], []>} : vector<8x32xf32>, vector<32x8xf32>, vector<8x8xf32> -> vector<8x8xf32>
    %c0_42 = arith.constant 0 : index
    %c0_43 = arith.constant 0 : index
    %39 = vector.load %arg6[%c0_42, %c0_43] : memref<8x32xf32, #tpu.memory_space<vmem>>, vector<8x32xf32>
    %c2_44 = arith.constant 2 : index
    %c0_45 = arith.constant 0 : index
    %c0_46 = arith.constant 0 : index
    %40 = vector.load %arg4[%c2_44, %c0_45, %c0_46] : memref<4x32x8xf32, #tpu.memory_space<vmem>>, vector<1x32x8xf32>
    %41 = vector.shape_cast %40 : vector<1x32x8xf32> to vector<32x8xf32>
    %cst_47 = arith.constant dense<0.000000e+00> : vector<8x8xf32>
    %42 = tpu.matmul %39, %41, %cst_47 {dimension_numbers = #tpu.dot_dimension_numbers<[1], [0], [0], [1], [0, 0, 1, 1], [], []>} : vector<8x32xf32>, vector<32x8xf32>, vector<8x8xf32> -> vector<8x8xf32>
    %43 = arith.addf %38, %42 : vector<8x8xf32>
    %44 = arith.addf %34, %43 : vector<8x8xf32>
    %c2_48 = arith.constant 2 : index
    %c0_49 = arith.constant 0 : index
    %c0_50 = arith.constant 0 : index
    %45 = vector.load %arg11[%c2_48, %c0_49, %c0_50] : memref<4x8x8xf32, #tpu.memory_space<vmem>>, vector<1x8x8xf32>
    %46 = vector.shape_cast %45 : vector<1x8x8xf32> to vector<8x8xf32>
    %47 = vector.shape_cast %44 : vector<8x8xf32> to vector<1x8x8xf32>
    tpu.vector_store %arg11[%c2_48, %c0_49, %c0_50], %47 {strides = array<i32>} : memref<4x8x8xf32, #tpu.memory_space<vmem>>, vector<1x8x8xf32>,
    %c3 = arith.constant 3 : index
    %c0_51 = arith.constant 0 : index
    %c0_52 = arith.constant 0 : index
    %48 = vector.load %arg11[%c3, %c0_51, %c0_52] : memref<4x8x8xf32, #tpu.memory_space<vmem>>, vector<1x8x8xf32>
    %49 = vector.shape_cast %48 : vector<1x8x8xf32> to vector<8x8xf32>
    %c0_53 = arith.constant 0 : index
    %c0_54 = arith.constant 0 : index
    %50 = vector.load %arg5[%c0_53, %c0_54] : memref<8x32xf32, #tpu.memory_space<vmem>>, vector<8x32xf32>
    %c3_55 = arith.constant 3 : index
    %c0_56 = arith.constant 0 : index
    %c0_57 = arith.constant 0 : index
    %51 = vector.load %arg3[%c3_55, %c0_56, %c0_57] : memref<4x32x8xf32, #tpu.memory_space<vmem>>, vector<1x32x8xf32>
    %52 = vector.shape_cast %51 : vector<1x32x8xf32> to vector<32x8xf32>
    %cst_58 = arith.constant dense<0.000000e+00> : vector<8x8xf32>
    %53 = tpu.matmul %50, %52, %cst_58 {dimension_numbers = #tpu.dot_dimension_numbers<[1], [0], [0], [1], [0, 0, 1, 1], [], []>} : vector<8x32xf32>, vector<32x8xf32>, vector<8x8xf32> -> vector<8x8xf32>
    %c0_59 = arith.constant 0 : index
    %c0_60 = arith.constant 0 : index
    %54 = vector.load %arg6[%c0_59, %c0_60] : memref<8x32xf32, #tpu.memory_space<vmem>>, vector<8x32xf32>
    %c3_61 = arith.constant 3 : index
    %c0_62 = arith.constant 0 : index
    %c0_63 = arith.constant 0 : index
    %55 = vector.load %arg4[%c3_61, %c0_62, %c0_63] : memref<4x32x8xf32, #tpu.memory_space<vmem>>, vector<1x32x8xf32>
    %56 = vector.shape_cast %55 : vector<1x32x8xf32> to vector<32x8xf32>
    %cst_64 = arith.constant dense<0.000000e+00> : vector<8x8xf32>
    %57 = tpu.matmul %54, %56, %cst_64 {dimension_numbers = #tpu.dot_dimension_numbers<[1], [0], [0], [1], [0, 0, 1, 1], [], []>} : vector<8x32xf32>, vector<32x8xf32>, vector<8x8xf32> -> vector<8x8xf32>
    %58 = arith.addf %53, %57 : vector<8x8xf32>
    %59 = arith.addf %49, %58 : vector<8x8xf32>
    %c3_65 = arith.constant 3 : index
    %c0_66 = arith.constant 0 : index
    %c0_67 = arith.constant 0 : index
    %60 = vector.load %arg11[%c3_65, %c0_66, %c0_67] : memref<4x8x8xf32, #tpu.memory_space<vmem>>, vector<1x8x8xf32>
    %61 = vector.shape_cast %60 : vector<1x8x8xf32> to vector<8x8xf32>
    %62 = vector.shape_cast %59 : vector<8x8xf32> to vector<1x8x8xf32>
    tpu.vector_store %arg11[%c3_65, %c0_66, %c0_67], %62 {strides = array<i32>} : memref<4x8x8xf32, #tpu.memory_space<vmem>>, vector<1x8x8xf32>,
    %c0_i32_68 = arith.constant 0 : i32
    %63 = arith.cmpi eq, %arg2, %c0_i32_68 : i32
    %64 = arith.extui %63 : i1 to i32
    %c0_i32_69 = arith.constant 0 : i32
    %65 = arith.cmpi ne, %64, %c0_i32_69 : i32
    scf.if %65 {
      %c0_70 = arith.constant 0 : index
      %c0_71 = arith.constant 0 : index
      %c0_72 = arith.constant 0 : index
      %66 = vector.load %arg11[%c0_70, %c0_71, %c0_72] : memref<4x8x8xf32, #tpu.memory_space<vmem>>, vector<1x8x8xf32>
      %67 = vector.shape_cast %66 : vector<1x8x8xf32> to vector<8x8xf32>
      %c0_73 = arith.constant 0 : index
      %c0_74 = arith.constant 0 : index
      %68 = vector.load %arg7[%c0_73, %c0_74] : memref<8x1xf32, #tpu.memory_space<vmem>>, vector<8x1xf32>
      %69 = vector.broadcast %68 : vector<8x1xf32> to vector<8x8xf32>
      %70 = arith.addf %67, %69 : vector<8x8xf32>
      %cst_75 = arith.constant 0.000000e+00 : f32
      %71 = vector.broadcast %cst_75 : f32 to vector<8x8xf32>
      %72 = arith.maximumf %70, %71 : vector<8x8xf32>
      %c0_76 = arith.constant 0 : index
      %c0_77 = arith.constant 0 : index
      %73 = vector.load %arg8[%c0_76, %c0_77] : memref<32x8xf32, #tpu.memory_space<vmem>>, vector<32x8xf32>
      %cst_78 = arith.constant dense<0.000000e+00> : vector<32x8xf32>
      %74 = tpu.matmul %73, %72, %cst_78 {dimension_numbers = #tpu.dot_dimension_numbers<[1], [0], [0], [1], [0, 0, 1, 1], [], []>} : vector<32x8xf32>, vector<8x8xf32>, vector<32x8xf32> -> vector<32x8xf32>
      %c0_79 = arith.constant 0 : index
      %c0_80 = arith.constant 0 : index
      %75 = vector.load %arg9[%c0_79, %c0_80] : memref<32x1xf32, #tpu.memory_space<vmem>>, vector<32x1xf32>
      %76 = vector.broadcast %75 : vector<32x1xf32> to vector<32x8xf32>
      %77 = arith.addf %74, %76 : vector<32x8xf32>
      %c0_81 = arith.constant 0 : index
      %c0_82 = arith.constant 0 : index
      %c0_83 = arith.constant 0 : index
      %78 = vector.load %arg10[%c0_81, %c0_82, %c0_83] : memref<4x32x8xf32, #tpu.memory_space<vmem>>, vector<1x32x8xf32>
      %79 = vector.shape_cast %78 : vector<1x32x8xf32> to vector<32x8xf32>
      %80 = vector.shape_cast %77 : vector<32x8xf32> to vector<1x32x8xf32>
      tpu.vector_store %arg10[%c0_81, %c0_82, %c0_83], %80 {strides = array<i32>} : memref<4x32x8xf32, #tpu.memory_space<vmem>>, vector<1x32x8xf32>,
      %c1_84 = arith.constant 1 : index
      %c0_85 = arith.constant 0 : index
      %c0_86 = arith.constant 0 : index
      %81 = vector.load %arg11[%c1_84, %c0_85, %c0_86] : memref<4x8x8xf32, #tpu.memory_space<vmem>>, vector<1x8x8xf32>
      %82 = vector.shape_cast %81 : vector<1x8x8xf32> to vector<8x8xf32>
      %c0_87 = arith.constant 0 : index
      %c0_88 = arith.constant 0 : index
      %83 = vector.load %arg7[%c0_87, %c0_88] : memref<8x1xf32, #tpu.memory_space<vmem>>, vector<8x1xf32>
      %84 = vector.broadcast %83 : vector<8x1xf32> to vector<8x8xf32>
      %85 = arith.addf %82, %84 : vector<8x8xf32>
      %cst_89 = arith.constant 0.000000e+00 : f32
      %86 = vector.broadcast %cst_89 : f32 to vector<8x8xf32>
      %87 = arith.maximumf %85, %86 : vector<8x8xf32>
      %c0_90 = arith.constant 0 : index
      %c0_91 = arith.constant 0 : index
      %88 = vector.load %arg8[%c0_90, %c0_91] : memref<32x8xf32, #tpu.memory_space<vmem>>, vector<32x8xf32>
      %cst_92 = arith.constant dense<0.000000e+00> : vector<32x8xf32>
      %89 = tpu.matmul %88, %87, %cst_92 {dimension_numbers = #tpu.dot_dimension_numbers<[1], [0], [0], [1], [0, 0, 1, 1], [], []>} : vector<32x8xf32>, vector<8x8xf32>, vector<32x8xf32> -> vector<32x8xf32>
      %c0_93 = arith.constant 0 : index
      %c0_94 = arith.constant 0 : index
      %90 = vector.load %arg9[%c0_93, %c0_94] : memref<32x1xf32, #tpu.memory_space<vmem>>, vector<32x1xf32>
      %91 = vector.broadcast %90 : vector<32x1xf32> to vector<32x8xf32>
      %92 = arith.addf %89, %91 : vector<32x8xf32>
      %c1_95 = arith.constant 1 : index
      %c0_96 = arith.constant 0 : index
      %c0_97 = arith.constant 0 : index
      %93 = vector.load %arg10[%c1_95, %c0_96, %c0_97] : memref<4x32x8xf32, #tpu.memory_space<vmem>>, vector<1x32x8xf32>
      %94 = vector.shape_cast %93 : vector<1x32x8xf32> to vector<32x8xf32>
      %95 = vector.shape_cast %92 : vector<32x8xf32> to vector<1x32x8xf32>
      tpu.vector_store %arg10[%c1_95, %c0_96, %c0_97], %95 {strides = array<i32>} : memref<4x32x8xf32, #tpu.memory_space<vmem>>, vector<1x32x8xf32>,
      %c2_98 = arith.constant 2 : index
      %c0_99 = arith.constant 0 : index
      %c0_100 = arith.constant 0 : index
      %96 = vector.load %arg11[%c2_98, %c0_99, %c0_100] : memref<4x8x8xf32, #tpu.memory_space<vmem>>, vector<1x8x8xf32>
      %97 = vector.shape_cast %96 : vector<1x8x8xf32> to vector<8x8xf32>
      %c0_101 = arith.constant 0 : index
      %c0_102 = arith.constant 0 : index
      %98 = vector.load %arg7[%c0_101, %c0_102] : memref<8x1xf32, #tpu.memory_space<vmem>>, vector<8x1xf32>
      %99 = vector.broadcast %98 : vector<8x1xf32> to vector<8x8xf32>
      %100 = arith.addf %97, %99 : vector<8x8xf32>
      %cst_103 = arith.constant 0.000000e+00 : f32
      %101 = vector.broadcast %cst_103 : f32 to vector<8x8xf32>
      %102 = arith.maximumf %100, %101 : vector<8x8xf32>
      %c0_104 = arith.constant 0 : index
      %c0_105 = arith.constant 0 : index
      %103 = vector.load %arg8[%c0_104, %c0_105] : memref<32x8xf32, #tpu.memory_space<vmem>>, vector<32x8xf32>
      %cst_106 = arith.constant dense<0.000000e+00> : vector<32x8xf32>
      %104 = tpu.matmul %103, %102, %cst_106 {dimension_numbers = #tpu.dot_dimension_numbers<[1], [0], [0], [1], [0, 0, 1, 1], [], []>} : vector<32x8xf32>, vector<8x8xf32>, vector<32x8xf32> -> vector<32x8xf32>
      %c0_107 = arith.constant 0 : index
      %c0_108 = arith.constant 0 : index
      %105 = vector.load %arg9[%c0_107, %c0_108] : memref<32x1xf32, #tpu.memory_space<vmem>>, vector<32x1xf32>
      %106 = vector.broadcast %105 : vector<32x1xf32> to vector<32x8xf32>
      %107 = arith.addf %104, %106 : vector<32x8xf32>
      %c2_109 = arith.constant 2 : index
      %c0_110 = arith.constant 0 : index
      %c0_111 = arith.constant 0 : index
      %108 = vector.load %arg10[%c2_109, %c0_110, %c0_111] : memref<4x32x8xf32, #tpu.memory_space<vmem>>, vector<1x32x8xf32>
      %109 = vector.shape_cast %108 : vector<1x32x8xf32> to vector<32x8xf32>
      %110 = vector.shape_cast %107 : vector<32x8xf32> to vector<1x32x8xf32>
      tpu.vector_store %arg10[%c2_109, %c0_110, %c0_111], %110 {strides = array<i32>} : memref<4x32x8xf32, #tpu.memory_space<vmem>>, vector<1x32x8xf32>,
      %c3_112 = arith.constant 3 : index
      %c0_113 = arith.constant 0 : index
      %c0_114 = arith.constant 0 : index
      %111 = vector.load %arg11[%c3_112, %c0_113, %c0_114] : memref<4x8x8xf32, #tpu.memory_space<vmem>>, vector<1x8x8xf32>
      %112 = vector.shape_cast %111 : vector<1x8x8xf32> to vector<8x8xf32>
      %c0_115 = arith.constant 0 : index
      %c0_116 = arith.constant 0 : index
      %113 = vector.load %arg7[%c0_115, %c0_116] : memref<8x1xf32, #tpu.memory_space<vmem>>, vector<8x1xf32>
      %114 = vector.broadcast %113 : vector<8x1xf32> to vector<8x8xf32>
      %115 = arith.addf %112, %114 : vector<8x8xf32>
      %cst_117 = arith.constant 0.000000e+00 : f32
      %116 = vector.broadcast %cst_117 : f32 to vector<8x8xf32>
      %117 = arith.maximumf %115, %116 : vector<8x8xf32>
      %c0_118 = arith.constant 0 : index
      %c0_119 = arith.constant 0 : index
      %118 = vector.load %arg8[%c0_118, %c0_119] : memref<32x8xf32, #tpu.memory_space<vmem>>, vector<32x8xf32>
      %cst_120 = arith.constant dense<0.000000e+00> : vector<32x8xf32>
      %119 = tpu.matmul %118, %117, %cst_120 {dimension_numbers = #tpu.dot_dimension_numbers<[1], [0], [0], [1], [0, 0, 1, 1], [], []>} : vector<32x8xf32>, vector<8x8xf32>, vector<32x8xf32> -> vector<32x8xf32>
      %c0_121 = arith.constant 0 : index
      %c0_122 = arith.constant 0 : index
      %120 = vector.load %arg9[%c0_121, %c0_122] : memref<32x1xf32, #tpu.memory_space<vmem>>, vector<32x1xf32>
      %121 = vector.broadcast %120 : vector<32x1xf32> to vector<32x8xf32>
      %122 = arith.addf %119, %121 : vector<32x8xf32>
      %c3_123 = arith.constant 3 : index
      %c0_124 = arith.constant 0 : index
      %c0_125 = arith.constant 0 : index
      %123 = vector.load %arg10[%c3_123, %c0_124, %c0_125] : memref<4x32x8xf32, #tpu.memory_space<vmem>>, vector<1x32x8xf32>
      %124 = vector.shape_cast %123 : vector<1x32x8xf32> to vector<32x8xf32>
      %125 = vector.shape_cast %122 : vector<32x8xf32> to vector<1x32x8xf32>
      tpu.vector_store %arg10[%c3_123, %c0_124, %c0_125], %125 {strides = array<i32>} : memref<4x32x8xf32, #tpu.memory_space<vmem>>, vector<1x32x8xf32>,
    } else {
    }
    return
  }
  func.func @transform_0(%arg0: i32, %arg1: i32, %arg2: i32) -> (i32, i32, i32) {
    %c0_i32 = arith.constant 0 : i32
    return %arg0, %arg2, %arg1 : i32, i32, i32
  }
  func.func @transform_1(%arg0: i32, %arg1: i32, %arg2: i32) -> (i32, i32, i32) {
    %c0_i32 = arith.constant 0 : i32
    return %arg0, %arg2, %arg1 : i32, i32, i32
  }
  func.func @transform_2(%arg0: i32, %arg1: i32, %arg2: i32) -> (i32, i32) {
    %c0_i32 = arith.constant 0 : i32
    %c0_i32_0 = arith.constant 0 : i32
    return %c0_i32, %arg2 : i32, i32
  }
  func.func @transform_3(%arg0: i32, %arg1: i32, %arg2: i32) -> (i32, i32) {
    %c0_i32 = arith.constant 0 : i32
    %c0_i32_0 = arith.constant 0 : i32
    return %c0_i32, %arg2 : i32, i32
  }
  func.func @transform_4(%arg0: i32, %arg1: i32, %arg2: i32) -> (i32, i32) {
    %c0_i32 = arith.constant 0 : i32
    %c0_i32_0 = arith.constant 0 : i32
    %c0_i32_1 = arith.constant 0 : i32
    return %c0_i32, %c0_i32_0 : i32, i32
  }
  func.func @transform_5(%arg0: i32, %arg1: i32, %arg2: i32) -> (i32, i32) {
    %c0_i32 = arith.constant 0 : i32
    %c0_i32_0 = arith.constant 0 : i32
    %c0_i32_1 = arith.constant 0 : i32
    return %c0_i32, %c0_i32_0 : i32, i32
  }
  func.func @transform_6(%arg0: i32, %arg1: i32, %arg2: i32) -> (i32, i32) {
    %c0_i32 = arith.constant 0 : i32
    %c0_i32_0 = arith.constant 0 : i32
    %c0_i32_1 = arith.constant 0 : i32
    return %c0_i32, %c0_i32_0 : i32, i32
  }
  func.func @transform_7(%arg0: i32, %arg1: i32, %arg2: i32) -> (i32, i32, i32) {
    %c0_i32 = arith.constant 0 : i32
    %c0_i32_0 = arith.constant 0 : i32
    return %arg0, %c0_i32, %arg1 : i32, i32, i32
  }
}

</mosaic_0001>

<bundles_post_ra>
// kernel: tpu_custom_call.1
= control target key start
LH: loop header
LB: loop body
LE: loop exit
PB: predicated region body
PF: predicated region fallthrough
CT: control target
= control target key end

     0   :  { %v1489_v0 = vmov 0.0   ;;  %vm46_vm0 = vcmask 261120   ;;  %vm1490_vm1 = vmmov 0   ;;  %v1491_v36 = vmov 0   ;;  %s1821_s1 = inlined_call_operand.vmem [shape: f32[4,32,8], index: 1, kind: input, shape index: {}]   ;;  %s1822_s0 = inlined_call_operand.vmem [shape: f32[4,32,8], index: 0, kind: input, shape index: {}]   ;;  %s1823_s3 = inlined_call_operand.vmem [shape: f32[8,32], index: 3, kind: input, shape index: {}]   ;;  %s1824_s2 = inlined_call_operand.vmem [shape: f32[8,32], index: 2, kind: input, shape index: {}]   ;;  %s1825_s4 = inlined_call_operand.vmem [shape: f32[8,1], index: 4, kind: input, shape index: {}]   ;;  %s1826_s6 = inlined_call_operand.vmem [shape: f32[32,1], index: 6, kind: input, shape index: {}]   ;;  %s1827_s5 = inlined_call_operand.vmem [shape: f32[32,8], index: 5, kind: input, shape index: {}]   ;;  %s1828_s7 = inlined_call_operand.vmem [shape: f32[4,32,8], index: 7, kind: output, shape index: {}]  }
   0x1   :  { %1364 = vmatprep.subr.mxu0 %v1489_v0  ;;  %1375 = vmatprep.subr.mxu1 %v1489_v0  ;;  %v45_v1 = vld [vmem:[%s1821_s1 + $0x18] sm:$0xff]  ;;  %v44_v3 = vld [vmem:[%s1821_s1 + $0x10] sm:$0xff]  ;;  %v43_v5 = vld [vmem:[%s1821_s1 + $0x8] sm:$0xff]  ;;  %vm30_vm2 = vcmask 64512  }
   0x2   :  { %v40_v2 = vld [vmem:[%s1822_s0 + $0x18] sm:$0xff]  ;;  %1365 = vmatpush3.msra.mxu0 %v45_v1  ;;  %v39_v4 = vld [vmem:[%s1822_s0 + $0x10] sm:$0xff]  ;;  %v38_v6 = vld [vmem:[%s1822_s0 + $0x8] sm:$0xff]  ;;  %1372 = vmatprep.mubr.msk.f32.mxu0 %vm1490_vm1, %v1489_v0  ;;  %31 = vst.msk [vmem:[#allocation2] sm:$0xff] %vm30_vm2, %v1489_v0 }
   0x3   :  { %1376 = vmatpush3.msra.mxu1 %v40_v2  ;;  %1366 = vmatprep.subr.mxu0 %v1489_v0  ;;  %v42_v7 = vld [vmem:[%s1821_s1] sm:$0xff]  ;;  %v1253_v11 = vld [vmem:[%s1821_s1 + $0x38] sm:$0xff]  ;;  %v1252_v13 = vld [vmem:[%s1821_s1 + $0x30] sm:$0xff]  ;;  %32 = vst.msk [vmem:[#allocation2 + $0x8] sm:$0xff] %vm30_vm2, %v1489_v0 }
   0x4   :  { %1377 = vmatprep.subr.mxu1 %v1489_v0  ;;  %1367 = vmatpush3.msra.mxu0 %v44_v3  ;;  %v37_v8 = vld [vmem:[%s1822_s0] sm:$0xff]  ;;  %v1249_v12 = vld [vmem:[%s1822_s0 + $0x38] sm:$0xff]  ;;  %v1248_v14 = vld [vmem:[%s1822_s0 + $0x30] sm:$0xff]  ;;  %33 = vst.msk [vmem:[#allocation2 + $0x10] sm:$0xff] %vm30_vm2, %v1489_v0 }
   0x5   :  { %1378 = vmatpush3.msra.mxu1 %v39_v4  ;;  %1368 = vmatprep.subr.mxu0 %v1489_v0  ;;  %v1567_v9 = vld [vmem:[%s1823_s3] sm:$0xff]  ;;  %v1251_v15 = vld [vmem:[%s1821_s1 + $0x28] sm:$0xff]  ;;  %v1263_v19 = vld [vmem:[%s1821_s1 + $0x58] sm:$0xff]  ;;  %34 = vst.msk [vmem:[#allocation2 + $0x18] sm:$0xff] %vm30_vm2, %v1489_v0 }
   0x6   :  { %1379 = vmatprep.subr.mxu1 %v1489_v0  ;;  %1369 = vmatpush3.msra.mxu0 %v43_v5  ;;  %v1572_v10 = vld [vmem:[%s1824_s2] sm:$0xff]  ;;  %v1247_v16 = vld [vmem:[%s1822_s0 + $0x28] sm:$0xff]  ;;  %v1259_v20 = vld [vmem:[%s1822_s0 + $0x58] sm:$0xff] }
   0x7   :  { %1380 = vmatpush3.msra.mxu1 %v38_v6  ;;  %1370 = vmatprep.subr.mxu0 %v1489_v0  ;;  %v1250_v17 = vld [vmem:[%s1821_s1 + $0x20] sm:$0xff]  ;;  %v1262_v21 = vld [vmem:[%s1821_s1 + $0x50] sm:$0xff]  ;;  %v1261_v23 = vld [vmem:[%s1821_s1 + $0x48] sm:$0xff] }
   0x8   :  { %1381 = vmatprep.subr.mxu1 %v1489_v0  ;;  %1371 = vmatpush3.msra.mxu0 %v42_v7  ;;  %v1246_v18 = vld [vmem:[%s1822_s0 + $0x20] sm:$0xff]  ;;  %v1258_v22 = vld [vmem:[%s1822_s0 + $0x50] sm:$0xff]  ;;  %v1257_v24 = vld [vmem:[%s1822_s0 + $0x48] sm:$0xff] }
   0x9   :  { %1382 = vmatpush3.msra.mxu1 %v37_v8  ;;  %1383 = vmatprep.mubr.msk.f32.mxu1 %vm1490_vm1, %v1489_v0  ;;  %v1260_v25 = vld [vmem:[%s1821_s1 + $0x40] sm:$0xff]  ;;  %v1273_v27 = vld [vmem:[%s1821_s1 + $0x78] sm:$0xff]  ;;  %v1272_v29 = vld [vmem:[%s1821_s1 + $0x70] sm:$0xff] }
   0xa   :  { %1373 = vmatmul.mubr.msk.f32.vlgmr.msra.gmra.mxu0 %vm46_vm0, %v1567_v9  ;;  %1384 = vmatmul.mubr.msk.f32.vlgmr.msra.gmra.mxu1 %vm46_vm0, %v1572_v10  ;;  %v1256_v26 = vld [vmem:[%s1822_s0 + $0x40] sm:$0xff]  ;;  %v1269_v28 = vld [vmem:[%s1822_s0 + $0x78] sm:$0xff]  ;;  %v1268_v30 = vld [vmem:[%s1822_s0 + $0x70] sm:$0xff] }
   0xb   :  { %1386 = vmatprep.subr.mxu0 %v1489_v0  ;;  %1397 = vmatprep.subr.mxu1 %v1489_v0  ;;  %v1271_v31 = vld [vmem:[%s1821_s1 + $0x68] sm:$0xff]  ;;  %v1270_v33 = vld [vmem:[%s1821_s1 + $0x60] sm:$0xff]  ;;  %v700_v39 = vld [vmem:[%s1826_s6 + $0x10] sm:$0xff] }
   0xc   :  { %1387 = vmatpush3.msra.mxu0 %v1253_v11  ;;  %1398 = vmatpush3.msra.mxu1 %v1249_v12  ;;  %v1267_v32 = vld [vmem:[%s1822_s0 + $0x68] sm:$0xff]  ;;  %v1266_v34 = vld [vmem:[%s1822_s0 + $0x60] sm:$0xff]  ;;  %v701_v40 = vld [vmem:[%s1826_s6 + $0x18] sm:$0xff] }
   0xd   :  { %1388 = vmatprep.subr.mxu0 %v1489_v0  ;;  %1399 = vmatprep.subr.mxu1 %v1489_v0  ;;  %v686_v35 = vld [vmem:[%s1825_s4] sm:$0xff]  ;;  %v699_v38 = vld [vmem:[%s1826_s6 + $0x8] sm:$0xff]  ;;  %v696_v61 = vld [vmem:[%s1827_s5 + $0x10] sm:$0xff] }
   0xe   :  { %1389 = vmatpush3.msra.mxu0 %v1252_v13  ;;  %1400 = vmatpush3.msra.mxu1 %v1248_v14  ;;  %v698_v37 = vld [vmem:[%s1826_s6] sm:$0xff]  ;;  %v197_v50 = vld [vmem:[#allocation2 + $0x8] sm:$0xff]  ;;  %v359_v63 = vld [vmem:[#allocation2 + $0x10] sm:$0xff] }
   0xf   :  { %1390 = vmatprep.subr.mxu0 %v1489_v0  ;;  %1401 = vmatprep.subr.mxu1 %v1489_v0  ;;  %v694_v41 = vld [vmem:[%s1827_s5] sm:$0xff]  ;;  %v695_v60 = vld [vmem:[%s1827_s5 + $0x8] sm:$0xff]  ;;  %v697_v1 = vld [vmem:[%s1827_s5 + $0x18] sm:$0xff] }
  0x10   :  { %1391 = vmatpush3.msra.mxu0 %v1251_v15  ;;  %1402 = vmatpush3.msra.mxu1 %v1247_v16  ;;  %v35_v43 = vld [vmem:[#allocation2] sm:$0xff]  ;;  %v521_v11 = vld [vmem:[#allocation2 + $0x18] sm:$0xff] }
  0x11   :  { %1392 = vmatprep.subr.mxu0 %v1489_v0  ;;  %1403 = vmatprep.subr.mxu1 %v1489_v0 }
  0x12   :  { %1393 = vmatpush3.msra.mxu0 %v1250_v17  ;;  %1394 = vmatprep.mubr.msk.f32.mxu0 %vm1490_vm1, %v1489_v0 }
  0x13   :  { %1404 = vmatpush3.msra.mxu1 %v1246_v18  ;;  %1405 = vmatprep.mubr.msk.f32.mxu1 %vm1490_vm1, %v1489_v0 }
  0x14   :  { %1395 = vmatmul.mubr.msk.f32.vlgmr.msra.gmra.mxu0 %vm46_vm0, %v1567_v9  ;;  %1406 = vmatmul.mubr.msk.f32.vlgmr.msra.gmra.mxu1 %vm46_vm0, %v1572_v10 }
  0x15   :  { %1408 = vmatprep.subr.mxu0 %v1489_v0  ;;  %1419 = vmatprep.subr.mxu1 %v1489_v0 }
  0x16   :  { %1409 = vmatpush3.msra.mxu0 %v1263_v19  ;;  %1420 = vmatpush3.msra.mxu1 %v1259_v20 }
  0x17   :  { %1410 = vmatprep.subr.mxu0 %v1489_v0  ;;  %1421 = vmatprep.subr.mxu1 %v1489_v0 }
  0x18   :  { %1411 = vmatpush3.msra.mxu0 %v1262_v21  ;;  %1422 = vmatpush3.msra.mxu1 %v1258_v22 }
  0x19   :  { %1412 = vmatprep.subr.mxu0 %v1489_v0  ;;  %1423 = vmatprep.subr.mxu1 %v1489_v0 }
  0x1a   :  { %1413 = vmatpush3.msra.mxu0 %v1261_v23  ;;  %1424 = vmatpush3.msra.mxu1 %v1257_v24 }
  0x1b   :  { %1414 = vmatprep.subr.mxu0 %v1489_v0  ;;  %1425 = vmatprep.subr.mxu1 %v1489_v0 }
  0x1c   :  { %1415 = vmatpush3.msra.mxu0 %v1260_v25  ;;  %1416 = vmatprep.mubr.msk.f32.mxu0 %vm1490_vm1, %v1489_v0 }
  0x1d   :  { %1426 = vmatpush3.msra.mxu1 %v1256_v26  ;;  %1427 = vmatprep.mubr.msk.f32.mxu1 %vm1490_vm1, %v1489_v0 }
  0x1e   :  { %1417 = vmatmul.mubr.msk.f32.vlgmr.msra.gmra.mxu0 %vm46_vm0, %v1567_v9  ;;  %1428 = vmatmul.mubr.msk.f32.vlgmr.msra.gmra.mxu1 %vm46_vm0, %v1572_v10 }
  0x1f   :  { %1430 = vmatprep.subr.mxu0 %v1489_v0  ;;  %1441 = vmatprep.subr.mxu1 %v1489_v0 }
  0x20   :  { %1431 = vmatpush3.msra.mxu0 %v1273_v27  ;;  %1442 = vmatpush3.msra.mxu1 %v1269_v28 }
  0x21   :  { %1432 = vmatprep.subr.mxu0 %v1489_v0  ;;  %1443 = vmatprep.subr.mxu1 %v1489_v0 }
  0x22   :  { %1433 = vmatpush3.msra.mxu0 %v1272_v29  ;;  %1444 = vmatpush3.msra.mxu1 %v1268_v30 }
  0x23   :  { %1434 = vmatprep.subr.mxu0 %v1489_v0  ;;  %1445 = vmatprep.subr.mxu1 %v1489_v0 }
  0x24   :  { %1435 = vmatpush3.msra.mxu0 %v1271_v31  ;;  %1446 = vmatpush3.msra.mxu1 %v1267_v32 }
  0x25   :  { %1436 = vmatprep.subr.mxu0 %v1489_v0  ;;  %1447 = vmatprep.subr.mxu1 %v1489_v0 }
  0x26   :  { %1437 = vmatpush3.msra.mxu0 %v1270_v33  ;;  %1438 = vmatprep.mubr.msk.f32.mxu0 %vm1490_vm1, %v1489_v0 }
  0x27   :  { %1448 = vmatpush3.msra.mxu1 %v1266_v34  ;;  %1449 = vmatprep.mubr.msk.f32.mxu1 %vm1490_vm1, %v1489_v0 }
  0x28   :  { %1439 = vmatmul.mubr.msk.f32.vlgmr.msra.gmra.mxu0 %vm46_vm0, %v1567_v9  ;;  %1450 = vmatmul.mubr.msk.f32.vlgmr.msra.gmra.mxu1 %vm46_vm0, %v1572_v10 }
  0x29   :  { %1487 = vset.pattern.permute.xlu0 %v1491_v36  ;;  %1488 = vset.pattern.permute.xlu1 %v1491_v36 }
  0x2a   :  { %689 = vperm.xlu0 %1487, %v686_v35   ;;  %966 = vperm.xlu1 %1488, %v686_v35  }
  0x2b   :  { %1454 = vmatprep.mubr.msk.f32.mxu0 %vm30_vm2, %v694_v41  ;;  %1462 = vmatprep.mubr.msk.f32.mxu1 %vm30_vm2, %v694_v41 }
  0x2e   :  { %827 = vperm.xlu0 %1487, %v686_v35   ;;  %1105 = vperm.xlu1 %1488, %v686_v35  }
  0x32   :  { %704 = vperm.xlu0 %1487, %v698_v37   ;;  %709 = vperm.xlu1 %1488, %v699_v38  }
  0x36   :  { %714 = vperm.xlu0 %1487, %v700_v39   ;;  %719 = vperm.xlu1 %1488, %v701_v40  }
  0x3a   :  { %842 = vperm.xlu0 %1487, %v698_v37   ;;  %847 = vperm.xlu1 %1488, %v699_v38  }
  0x3e   :  { %852 = vperm.xlu0 %1487, %v700_v39   ;;  %857 = vperm.xlu1 %1488, %v701_v40  }
  0x42   :  { %981 = vperm.xlu0 %1487, %v698_v37   ;;  %986 = vperm.xlu1 %1488, %v699_v38  }
  0x46   :  { %991 = vperm.xlu0 %1487, %v700_v39   ;;  %996 = vperm.xlu1 %1488, %v701_v40  }
  0x4a   :  { %1120 = vperm.xlu0 %1487, %v698_v37   ;;  %1125 = vperm.xlu1 %1488, %v699_v38  }
  0x4e   :  { %1130 = vperm.xlu0 %1487, %v700_v39   ;;  %1135 = vperm.xlu1 %1488, %v701_v40  }
  0xa5   :  { %v690_v52 = vpop.permute.xlu0 %689  ;;  %v967_v13 = vpop.permute.xlu1 %966 }
  0xa9   :  { %v828_v2 = vpop.permute.xlu0 %827  ;;  %v1106_v21 = vpop.permute.xlu1 %1105 }
  0xad   :  { %v710_v25 = vpop.permute.xlu1 %709  ;;  %v705_v26 = vpop.permute.xlu0 %704 }
  0xb1   :  { %v720_v27 = vpop.permute.xlu1 %719  ;;  %v715_v28 = vpop.permute.xlu0 %714 }
  0xb5   :  { %v848_v33 = vpop.permute.xlu1 %847  ;;  %v843_v36 = vpop.permute.xlu0 %842 }
  0xb9   :  { %v858_v39 = vpop.permute.xlu1 %857 }
  0xca   :  { %v116_v42 = vpop.f32.mrf.mxu0  ;;  %v189_v44 = vpop.f32.mrf.mxu1 }
  0xcb   :  { %v190_v45 = vadd.f32 %v189_v44, %v116_v42  ;;  %v853_v42 = vpop.permute.xlu0 %852 }
  0xcc   :  { %v1374_v46 = vpop.f32.mrf.mxu0  ;;  %v1385_v47 = vpop.f32.mrf.mxu1 }
  0xcd   :  { %v193_v48 = vadd.f32 %v190_v45, %v35_v43  ;;  %v987_v47 = vpop.permute.xlu1 %986 }
  0xcf   :  { %195 = vst.msk [vmem:[#allocation2] sm:$0xff] %vm30_vm2, %v193_v48 }
  0xd4   :  { %v279_v49 = vpop.f32.mrf.mxu0  ;;  %v352_v51 = vpop.f32.mrf.mxu1 }
  0xd5   :  { %v353_v53 = vadd.f32 %v352_v51, %v279_v49 }
  0xd6   :  { %v1396_v54 = vpop.f32.mrf.mxu0  ;;  %v1407_v55 = vpop.f32.mrf.mxu1  ;;  %v685_v56 = vld [vmem:[#allocation2] sm:$0xff] }
  0xd7   :  { %v356_v57 = vadd.f32 %v353_v53, %v197_v50  ;;  %v692_v58 = vadd.f32 %v690_v52, %v685_v56  ;;  %v982_v50 = vpop.permute.xlu0 %981  ;;  %v997_v53 = vpop.permute.xlu1 %996 }
  0xd9   :  { %357 = vst.msk [vmem:[#allocation2 + $0x8] sm:$0xff] %vm30_vm2, %v356_v57  ;;  %v693_v59 = vmax.f32 %v692_v58, 0.0 }
  0xdb   :  { %1452 = vmatprep.subr.mxu0 %v693_v59  ;;  %v992_v56 = vpop.permute.xlu0 %991 }
  0xdc   :  { %1453 = vmatpush3.msra.mxu0 %v693_v59 }
  0xdd   :  { %1455 = vmatmul.mubr.msk.f32.vlgmr.msra.gmra.mxu0 %vm30_vm2, %v695_v60 }
  0xde   :  { %v441_v62 = vpop.f32.mrf.mxu0  ;;  %v514_v0 = vpop.f32.mrf.mxu1  ;;  %1457 = vmatprep.mubr.msk.f32.mxu0 %vm30_vm2, %v696_v61 }
  0xdf   :  { %v515_v3 = vadd.f32 %v514_v0, %v441_v62  ;;  %v1121_v62 = vpop.permute.xlu0 %1120 }
  0xe0   :  { %v1418_v4 = vpop.f32.mrf.mxu0  ;;  %v1429_v5 = vpop.f32.mrf.mxu1  ;;  %v823_v6 = vld [vmem:[#allocation2 + $0x8] sm:$0xff] }
  0xe1   :  { %v518_v7 = vadd.f32 %v515_v3, %v359_v63  ;;  %1458 = vmatmul.mubr.msk.f32.gmra.mxu0 %vm30_vm2, %v697_v1  ;;  %v830_v8 = vadd.f32 %v828_v2, %v823_v6 }
  0xe2   :  { %1470 = vmatprep.mubr.msk.f32.mxu0 %vm30_vm2, %v694_v41 }
  0xe3   :  { %519 = vst.msk [vmem:[#allocation2 + $0x10] sm:$0xff] %vm30_vm2, %v518_v7  ;;  %v831_v9 = vmax.f32 %v830_v8, 0.0  ;;  %v1131_v6 = vpop.permute.xlu0 %1130 }
  0xe5   :  { %1460 = vmatprep.subr.mxu1 %v831_v9 }
  0xe6   :  { %1461 = vmatpush3.msra.mxu1 %v831_v9 }
  0xe7   :  { %1463 = vmatmul.mubr.msk.f32.vlgmr.msra.gmra.mxu1 %vm30_vm2, %v695_v60 }
  0xe8   :  { %v603_v10 = vpop.f32.mrf.mxu0  ;;  %v676_v12 = vpop.f32.mrf.mxu1  ;;  %1465 = vmatprep.mubr.msk.f32.mxu1 %vm30_vm2, %v696_v61 }
  0xe9   :  { %v677_v14 = vadd.f32 %v676_v12, %v603_v10 }
  0xea   :  { %v1440_v15 = vpop.f32.mrf.mxu0  ;;  %v1451_v16 = vpop.f32.mrf.mxu1  ;;  %v962_v17 = vld [vmem:[#allocation2 + $0x10] sm:$0xff] }
  0xeb   :  { %v680_v18 = vadd.f32 %v677_v14, %v521_v11  ;;  %1466 = vmatmul.mubr.msk.f32.gmra.mxu1 %vm30_vm2, %v697_v1  ;;  %v969_v19 = vadd.f32 %v967_v13, %v962_v17 }
  0xec   :  { %1478 = vmatprep.mubr.msk.f32.mxu1 %vm30_vm2, %v694_v41 }
  0xed   :  { %681 = vst.msk [vmem:[#allocation2 + $0x18] sm:$0xff] %vm30_vm2, %v680_v18  ;;  %v970_v20 = vmax.f32 %v969_v19, 0.0 }
  0xef   :  { %1468 = vmatprep.subr.mxu0 %v970_v20 }
  0xf0   :  { %1469 = vmatpush3.msra.mxu0 %v970_v20 }
  0xf1   :  { %1471 = vmatmul.mubr.msk.f32.vlgmr.msra.gmra.mxu0 %vm30_vm2, %v695_v60 }
  0xf2   :  { %1473 = vmatprep.mubr.msk.f32.mxu0 %vm30_vm2, %v696_v61 }
  0xf4   :  { %v1101_v22 = vld [vmem:[#allocation2 + $0x18] sm:$0xff] }
  0xf5   :  { %1474 = vmatmul.mubr.msk.f32.gmra.mxu0 %vm30_vm2, %v697_v1  ;;  %v1108_v23 = vadd.f32 %v1106_v21, %v1101_v22 }
  0xf7   :  { %v1109_v24 = vmax.f32 %v1108_v23, 0.0 }
  0xf9   :  { %1476 = vmatprep.subr.mxu1 %v1109_v24 }
  0xfa   :  { %1477 = vmatpush3.msra.mxu1 %v1109_v24 }
  0xfb   :  { %1479 = vmatmul.mubr.msk.f32.vlgmr.msra.gmra.mxu1 %vm30_vm2, %v695_v60 }
  0xfc   :  { %1481 = vmatprep.mubr.msk.f32.mxu1 %vm30_vm2, %v696_v61  ;;  %v1126_v61 = vpop.permute.xlu1 %1125 }
  0xff   :  { %1482 = vmatmul.mubr.msk.f32.gmra.mxu1 %vm30_vm2, %v697_v1 }
 0x100   :  { %v1136_v3 = vpop.permute.xlu1 %1135 }
 0x19d   :  { %v1456_v29 = vpop.f32.mrf.mxu0 }
 0x19e   :  { %v806_v30 = vadd.f32 %v1456_v29, %v710_v25 }
 0x19f   :  { %v800_v31 = vpop.f32.mrf.mxu0 }
 0x1a0   :  { %820 = vst.msk [vmem:[%s1828_s7 + $0x8] sm:$0xff] %vm30_vm2, %v806_v30  ;;  %v801_v32 = vadd.f32 %v800_v31, %v705_v26 }
 0x1a1   :  { %v1459_v34 = vpop.f32.mrf.mxu0 }
 0x1a2   :  { %819 = vst.msk [vmem:[%s1828_s7] sm:$0xff] %vm30_vm2, %v801_v32  ;;  %v816_v35 = vadd.f32 %v1459_v34, %v720_v27 }
 0x1a3   :  { %v810_v37 = vpop.f32.mrf.mxu0 }
 0x1a4   :  { %822 = vst.msk [vmem:[%s1828_s7 + $0x18] sm:$0xff] %vm30_vm2, %v816_v35  ;;  %v811_v38 = vadd.f32 %v810_v37, %v715_v28 }
 0x1a6   :  { %821 = vst.msk [vmem:[%s1828_s7 + $0x10] sm:$0xff] %vm30_vm2, %v811_v38 }
 0x1a7   :  { %v1464_v40 = vpop.f32.mrf.mxu1 }
 0x1a8   :  { %v944_v41 = vadd.f32 %v1464_v40, %v848_v33 }
 0x1a9   :  { %v938_v43 = vpop.f32.mrf.mxu1 }
 0x1aa   :  { %1285 = vst.msk [vmem:[%s1828_s7 + $0x28] sm:$0xff] %vm30_vm2, %v944_v41  ;;  %v939_v44 = vadd.f32 %v938_v43, %v843_v36 }
 0x1ab   :  { %v1467_v45 = vpop.f32.mrf.mxu1 }
 0x1ac   :  { %1284 = vst.msk [vmem:[%s1828_s7 + $0x20] sm:$0xff] %vm30_vm2, %v939_v44  ;;  %v954_v46 = vadd.f32 %v1467_v45, %v858_v39 }
 0x1ad   :  { %v948_v48 = vpop.f32.mrf.mxu1 }
 0x1ae   :  { %1287 = vst.msk [vmem:[%s1828_s7 + $0x38] sm:$0xff] %vm30_vm2, %v954_v46  ;;  %v949_v49 = vadd.f32 %v948_v48, %v853_v42 }
 0x1b0   :  { %1286 = vst.msk [vmem:[%s1828_s7 + $0x30] sm:$0xff] %vm30_vm2, %v949_v49 }
 0x1b1   :  { %v1472_v51 = vpop.f32.mrf.mxu0 }
 0x1b2   :  { %v1083_v52 = vadd.f32 %v1472_v51, %v987_v47 }
 0x1b3   :  { %v1077_v54 = vpop.f32.mrf.mxu0 }
 0x1b4   :  { %1293 = vst.msk [vmem:[%s1828_s7 + $0x48] sm:$0xff] %vm30_vm2, %v1083_v52  ;;  %v1078_v55 = vadd.f32 %v1077_v54, %v982_v50 }
 0x1b5   :  { %v1475_v57 = vpop.f32.mrf.mxu0 }
 0x1b6   :  { %1292 = vst.msk [vmem:[%s1828_s7 + $0x40] sm:$0xff] %vm30_vm2, %v1078_v55  ;;  %v1093_v58 = vadd.f32 %v1475_v57, %v997_v53 }
 0x1b7   :  { %v1087_v59 = vpop.f32.mrf.mxu0 }
 0x1b8   :  { %1295 = vst.msk [vmem:[%s1828_s7 + $0x58] sm:$0xff] %vm30_vm2, %v1093_v58  ;;  %v1088_v60 = vadd.f32 %v1087_v59, %v992_v56 }
 0x1ba   :  { %1294 = vst.msk [vmem:[%s1828_s7 + $0x50] sm:$0xff] %vm30_vm2, %v1088_v60 }
 0x1bb   :  { %v1480_v63 = vpop.f32.mrf.mxu1 }
 0x1bc   :  { %v1222_v0 = vadd.f32 %v1480_v63, %v1126_v61 }
 0x1bd   :  { %v1216_v1 = vpop.f32.mrf.mxu1 }
 0x1be   :  { %1301 = vst.msk [vmem:[%s1828_s7 + $0x68] sm:$0xff] %vm30_vm2, %v1222_v0  ;;  %v1217_v2 = vadd.f32 %v1216_v1, %v1121_v62 }
 0x1bf   :  { %v1483_v4 = vpop.f32.mrf.mxu1 }
 0x1c0   :  { %1300 = vst.msk [vmem:[%s1828_s7 + $0x60] sm:$0xff] %vm30_vm2, %v1217_v2  ;;  %v1232_v5 = vadd.f32 %v1483_v4, %v1136_v3 }
 0x1c1   :  { %v1226_v7 = vpop.f32.mrf.mxu1 }
 0x1c2   :  { %1303 = vst.msk [vmem:[%s1828_s7 + $0x78] sm:$0xff] %vm30_vm2, %v1232_v5  ;;  %v1227_v8 = vadd.f32 %v1226_v7, %v1131_v6 }
 0x1c4   :  { %1302 = vst.msk [vmem:[%s1828_s7 + $0x70] sm:$0xff] %vm30_vm2, %v1227_v8 }

</bundles_post_ra>
